<compile_context>
chip_gen: v6e
topology: v6e:2x2x1
jax: 0.10.0
libtpu: 0.0.40
codegen_flags: <defaults>
</compile_context>

<pallas_src>
import jax
import jax.numpy as jnp
from jax.experimental import pallas as pl
from jax.experimental.pallas import tpu as pltpu


# ---------------------------------------------------------------------------
# Schedules (parameter setup -> plain JAX, mirrors ngldm_schedules in PyTorch)
# ---------------------------------------------------------------------------
def ngldm_schedules(beta1: float, beta2: float, T: int):
    assert beta1 < beta2 < 1.0
    beta_t = (beta2 - beta1) * jnp.arange(0, T + 1, dtype=jnp.float32) / T + beta1
    sqrt_beta_t = jnp.sqrt(beta_t)
    alpha_t = 1.0 - beta_t
    log_alpha_t = jnp.log(alpha_t)
    alphabar_t = jnp.exp(jnp.cumsum(log_alpha_t, axis=0))
    sqrtab = jnp.sqrt(alphabar_t)
    oneover_sqrta = 1.0 / jnp.sqrt(alpha_t)
    sqrtmab = jnp.sqrt(1.0 - alphabar_t)
    mab_over_sqrtmab = (1.0 - alpha_t) / sqrtmab
    return {
        "alpha_t": alpha_t,
        "oneover_sqrta": oneover_sqrta,
        "sqrt_beta_t": sqrt_beta_t,
        "alphabar_t": alphabar_t,
        "sqrtab": sqrtab,
        "sqrtmab": sqrtmab,
        "mab_over_sqrtmab": mab_over_sqrtmab,
    }


# ---------------------------------------------------------------------------
# Pallas kernel: noising + (block-diag batched) eps_model MLP + partial SSE
# ---------------------------------------------------------------------------
def _ngldm_kernel(x_ref,      # (1, BB*C,  HW)  bf16, lane-dense over HW
                  eps_ref,    # (1, BB*C,  HW)  bf16
                  a_ref,      # (1, BB*C,  1)   f32  sqrtab[t_b]  (channel-repeated)
                  m_ref,      # (1, BB*C,  1)   f32  sqrtmab[t_b]
                  b1c_ref,    # (1, BB*HID,1)   f32  b1 + (t_b/T)*wt  per batch
                  w1_ref,     # (BB*HID, BB*C)  bf16 block-diag W1^T
                  w2_ref,     # (BB*C, BB*HID)  bf16 block-diag W2^T
                  b2_ref,     # (BB*C, 1)       f32  b2^T tiled over BB
                  loss_ref):  # (1, 1, HW)      f32  lane-dense partial SSE row
    x = x_ref[0].astype(jnp.float32)          # (BB*C, HW)
    e = eps_ref[0].astype(jnp.float32)        # (BB*C, HW)

    # q(x_t | x_0): x_t = sqrtab * x + sqrtmab * eps  (f32), bf16 into the MXU
    x_t = (a_ref[0] * x + m_ref[0] * e).astype(jnp.bfloat16)

    # eps_model(x_t, t/T): one block-diagonal matmul covers all BB batches.
    h = jnp.dot(w1_ref[...], x_t, preferred_element_type=jnp.float32)   # (BB*HID, HW)
    h = jnp.maximum(h + b1c_ref[0], 0.0).astype(jnp.bfloat16)
    eps_hat = jnp.dot(w2_ref[...], h, preferred_element_type=jnp.float32) + b2_ref[...]

    # f32 squared error, sublane-only reduce -> lane-dense partial sums.
    diff = e - eps_hat
    loss_ref[0] = jnp.sum(diff * diff, axis=0, keepdims=True)           # (1, HW)


def _pick_block_batch(B, C, HW, budget_bytes=16 << 20, min_grid=2):
    """Largest divisor BB of B whose double-buffered bf16 (x+eps) block fits
    `budget_bytes`, preferring G = B//BB >= min_grid (v7x has 2 TensorCores)
    and capping BB so the block-diagonal MXU contraction stays <= 256 wide."""
    per_elem = C * HW * 2 * 2                 # x + eps, bf16 bytes per batch elem
    bb_cap = max(1, 256 // max(C, 1))         # limit block-diag MXU waste
    divisors = [d for d in range(1, B + 1) if B % d == 0 and d <= bb_cap]
    fitting = [d for d in divisors if 2 * d * per_elem <= budget_bytes]
    if not fitting:
        raise ValueError(
            f"A single batch element's double-buffered block "
            f"({2 * per_elem} bytes) exceeds the VMEM budget ({budget_bytes}); "
            f"raise budget_bytes / vmem_limit_bytes.")
    preferred = [d for d in fitting if B // d >= min_grid]
    return max(preferred) if preferred else max(fitting)


def _sample_t_eps(key, shape, T, dtype):
    """Glue mirroring the PyTorch forward's random draws (torch.randint + sampler)."""
    kt, ke = jax.random.split(key)
    t = jax.random.randint(kt, (shape[0],), 1, T + 1)
    eps = jax.random.normal(ke, shape, dtype=dtype)
    return t, eps


def ngldm_forward(x_nchw, key, params, sched, T):
    """x_nchw: (B, C, H, W) float32 (PyTorch NCHW). Returns scalar MSE loss."""
    B, C, H, W = x_nchw.shape
    HW = H * W
    HID = params["w1"].shape[1]

    t, eps_nchw = _sample_t_eps(key, x_nchw.shape, T, x_nchw.dtype)

    sqrtab_t = sched["sqrtab"][t]                       # (B,)
    sqrtmab_t = sched["sqrtmab"][t]                     # (B,)
    tnorm = t.astype(jnp.float32) / float(T)            # (B,)

    BB = _pick_block_batch(B, C, HW)
    G = B // BB
    BBC = BB * C
    BBH = BB * HID

    # bf16 streamed activations in a dense (G, BB*C, HW) layout (pure reshape).
    x_f = x_nchw.astype(jnp.bfloat16).reshape(G, BBC, HW)
    eps_f = eps_nchw.astype(jnp.bfloat16).reshape(G, BBC, HW)

    # Channel-repeated per-row noising scales (tiny f32 side inputs).
    a_col = jnp.repeat(sqrtab_t, C).reshape(G, BBC, 1).astype(jnp.float32)
    m_col = jnp.repeat(sqrtmab_t, C).reshape(G, BBC, 1).astype(jnp.float32)

    # Per-batch conditioned first-layer bias column: b1 + (t/T) * wt.
    b1c = params["b1"].T[None] + tnorm[:, None, None] * params["wt"].T[None]   # (B, HID, 1)
    b1c = b1c.reshape(G, BBH, 1).astype(jnp.float32)

    # Block-diagonal weights: one MXU call handles all BB batch elements.
    eye = jnp.eye(BB, dtype=jnp.float32)
    w1blk = jnp.kron(eye, params["w1"].T).astype(jnp.bfloat16)   # (BB*HID, BB*C)
    w2blk = jnp.kron(eye, params["w2"].T).astype(jnp.bfloat16)   # (BB*C, BB*HID)
    b2col = jnp.tile(params["b2"].T, (BB, 1)).astype(jnp.float32)  # (BB*C, 1)

    grid_spec = pltpu.PrefetchScalarGridSpec(
        num_scalar_prefetch=0,
        grid=(G,),
        in_specs=[
            pl.BlockSpec((1, BBC, HW), lambda g: (g, 0, 0)),   # x
            pl.BlockSpec((1, BBC, HW), lambda g: (g, 0, 0)),   # eps
            pl.BlockSpec((1, BBC, 1),  lambda g: (g, 0, 0)),   # sqrtab[t]
            pl.BlockSpec((1, BBC, 1),  lambda g: (g, 0, 0)),   # sqrtmab[t]
            pl.BlockSpec((1, BBH, 1),  lambda g: (g, 0, 0)),   # b1 + (t/T)*wt
            pl.BlockSpec((BBH, BBC),   lambda g: (0, 0)),      # block-diag W1^T
            pl.BlockSpec((BBC, BBH),   lambda g: (0, 0)),      # block-diag W2^T
            pl.BlockSpec((BBC, 1),     lambda g: (0, 0)),      # b2 column
        ],
        out_specs=pl.BlockSpec((1, 1, HW), lambda g: (g, 0, 0)),
    )

    partial = pl.pallas_call(
        _ngldm_kernel,
        out_shape=jax.ShapeDtypeStruct((G, 1, HW), jnp.float32),
        grid_spec=grid_spec,
        compiler_params=pltpu.CompilerParams(
            dimension_semantics=("parallel",),      # independent per-block partial sums
            vmem_limit_bytes=48 * 1024 * 1024,      # <= v7x 64 MiB; above v5e/v6e defaults
        ),
    )(x_f, eps_f, a_col, m_col, b1c, w1blk, w2blk, b2col)

    # nn.MSELoss() default reduction='mean'
    return jnp.sum(partial) / float(B * C * H * W)


# ---------------------------------------------------------------------------
# Pure-JAX reference (same RNG path, same bf16-rounded inputs, f32 math)
# ---------------------------------------------------------------------------
def ngldm_reference(x_nchw, key, params, sched, T):
    B, C, H, W = x_nchw.shape
    t, eps = _sample_t_eps(key, x_nchw.shape, T, x_nchw.dtype)
    xb = x_nchw.astype(jnp.bfloat16).astype(jnp.float32)
    eb = eps.astype(jnp.bfloat16).astype(jnp.float32)
    a = sched["sqrtab"][t][:, None, None, None]
    m = sched["sqrtmab"][t][:, None, None, None]
    x_t = a * xb + m * eb
    tn = t.astype(jnp.float32) / float(T)

    xt_f = jnp.transpose(x_t, (0, 2, 3, 1)).reshape(B, H * W, C)
    h = jnp.einsum("bpc,ch->bph", xt_f, params["w1"])
    h = h + params["b1"][None] + tn[:, None, None] * params["wt"][None]
    h = jnp.maximum(h, 0.0)
    eps_hat = jnp.einsum("bph,hc->bpc", h, params["w2"]) + params["b2"][None]
    eps_flat = jnp.transpose(eb, (0, 2, 3, 1)).reshape(B, H * W, C)
    return jnp.mean((eps_flat - eps_hat) ** 2)


# ---------------------------------------------------------------------------
# Deterministic parameter init for the synthetic eps_model (1x1-conv MLP)
# ---------------------------------------------------------------------------
def init_eps_model_params(C, HID, key):
    k1, k2, k3 = jax.random.split(key, 3)
    return {
        "w1": jax.random.normal(k1, (C, HID), jnp.float32) * 0.1,
        "b1": jnp.zeros((1, HID), jnp.float32),
        "wt": jax.random.normal(k2, (1, HID), jnp.float32) * 0.1,
        "w2": jax.random.normal(k3, (HID, C), jnp.float32) * 0.1,
        "b2": jnp.zeros((1, C), jnp.float32),
    }


if __name__ == "__main__":
    B, C, H, W = 2, 4, 16, 16
    HID = 32
    T = 100
    betas = (1e-4, 0.02)

    root = jax.random.PRNGKey(0)
    k_x, k_fwd, k_par = jax.random.split(root, 3)

    x = jax.random.normal(k_x, (B, C, H, W), dtype=jnp.float32)   # NCHW like PyTorch
    params = init_eps_model_params(C, HID, k_par)
    sched = ngldm_schedules(betas[0], betas[1], T)

    loss = ngldm_forward(x, k_fwd, params, sched, T)
    loss = jax.block_until_ready(loss)

    ref = jax.block_until_ready(ngldm_reference(x, k_fwd, params, sched, T))

    # sanity: loss is a finite scalar and matches the pure-JAX reference
    assert loss.shape == () and bool(jnp.isfinite(loss))
    assert bool(jnp.allclose(loss, ref, rtol=2e-2, atol=1e-4)), (loss, ref)
    print("KERNEL_OK")
</pallas_src>

<mosaic_0001>
module attributes {stable_mosaic.version = 11 : i64} {
  func.func @_ngldm_kernel(%arg0: i32, %arg1: memref<1x4x256xbf16, #tpu.memory_space<vmem>>, %arg2: memref<1x4x256xbf16, #tpu.memory_space<vmem>>, %arg3: memref<1x4x1xf32, #tpu.memory_space<vmem>>, %arg4: memref<1x4x1xf32, #tpu.memory_space<vmem>>, %arg5: memref<1x32x1xf32, #tpu.memory_space<vmem>>, %arg6: memref<32x4xbf16, #tpu.memory_space<vmem>>, %arg7: memref<4x32xbf16, #tpu.memory_space<vmem>>, %arg8: memref<4x1xf32, #tpu.memory_space<vmem>>, %arg9: memref<1x1x256xf32, #tpu.memory_space<vmem>>) attributes {dimension_semantics = [#tpu.dimension_semantics<parallel>], iteration_bounds = array<i64: 2>, scalar_prefetch = 0 : i64, scratch_operands = 0 : i64, tpu.core_type = #tpu.core_type<tc>, window_params = [{transform_indices = @transform_0, window_bounds = array<i64: 1, 4, 256>}, {transform_indices = @transform_1, window_bounds = array<i64: 1, 4, 256>}, {transform_indices = @transform_2, window_bounds = array<i64: 1, 4, 1>}, {transform_indices = @transform_3, window_bounds = array<i64: 1, 4, 1>}, {transform_indices = @transform_4, window_bounds = array<i64: 1, 32, 1>}, {pipeline_mode = #tpu.pipeline_mode<synchronous>, transform_indices = @transform_5, window_bounds = array<i64: 32, 4>}, {pipeline_mode = #tpu.pipeline_mode<synchronous>, transform_indices = @transform_6, window_bounds = array<i64: 4, 32>}, {pipeline_mode = #tpu.pipeline_mode<synchronous>, transform_indices = @transform_7, window_bounds = array<i64: 4, 1>}, {transform_indices = @transform_8, window_bounds = array<i64: 1, 1, 256>}]} {
    %c0 = arith.constant 0 : index
    %c0_0 = arith.constant 0 : index
    %c0_1 = arith.constant 0 : index
    %0 = vector.load %arg1[%c0, %c0_0, %c0_1] : memref<1x4x256xbf16, #tpu.memory_space<vmem>>, vector<1x4x256xbf16>
    %1 = vector.shape_cast %0 : vector<1x4x256xbf16> to vector<4x256xbf16>
    %2 = arith.extf %1 : vector<4x256xbf16> to vector<4x256xf32>
    %c0_2 = arith.constant 0 : index
    %c0_3 = arith.constant 0 : index
    %c0_4 = arith.constant 0 : index
    %3 = vector.load %arg2[%c0_2, %c0_3, %c0_4] : memref<1x4x256xbf16, #tpu.memory_space<vmem>>, vector<1x4x256xbf16>
    %4 = vector.shape_cast %3 : vector<1x4x256xbf16> to vector<4x256xbf16>
    %5 = arith.extf %4 : vector<4x256xbf16> to vector<4x256xf32>
    %c0_5 = arith.constant 0 : index
    %c0_6 = arith.constant 0 : index
    %c0_7 = arith.constant 0 : index
    %6 = vector.load %arg3[%c0_5, %c0_6, %c0_7] : memref<1x4x1xf32, #tpu.memory_space<vmem>>, vector<1x4x1xf32>
    %7 = vector.shape_cast %6 : vector<1x4x1xf32> to vector<4x1xf32>
    %8 = vector.broadcast %7 : vector<4x1xf32> to vector<4x256xf32>
    %9 = arith.mulf %8, %2 : vector<4x256xf32>
    %c0_8 = arith.constant 0 : index
    %c0_9 = arith.constant 0 : index
    %c0_10 = arith.constant 0 : index
    %10 = vector.load %arg4[%c0_8, %c0_9, %c0_10] : memref<1x4x1xf32, #tpu.memory_space<vmem>>, vector<1x4x1xf32>
    %11 = vector.shape_cast %10 : vector<1x4x1xf32> to vector<4x1xf32>
    %12 = vector.broadcast %11 : vector<4x1xf32> to vector<4x256xf32>
    %13 = arith.mulf %12, %5 : vector<4x256xf32>
    %14 = arith.addf %9, %13 : vector<4x256xf32>
    %15 = arith.truncf %14 : vector<4x256xf32> to vector<4x256xbf16>
    %c0_11 = arith.constant 0 : index
    %c0_12 = arith.constant 0 : index
    %16 = vector.load %arg6[%c0_11, %c0_12] : memref<32x4xbf16, #tpu.memory_space<vmem>>, vector<32x4xbf16>
    %cst = arith.constant dense<0.000000e+00> : vector<32x256xf32>
    %17 = tpu.matmul %16, %15, %cst {dimension_numbers = #tpu.dot_dimension_numbers<[1], [0], [0], [1], [0, 0, 1, 1], [], []>} : vector<32x4xbf16>, vector<4x256xbf16>, vector<32x256xf32> -> vector<32x256xf32>
    %c0_13 = arith.constant 0 : index
    %c0_14 = arith.constant 0 : index
    %c0_15 = arith.constant 0 : index
    %18 = vector.load %arg5[%c0_13, %c0_14, %c0_15] : memref<1x32x1xf32, #tpu.memory_space<vmem>>, vector<1x32x1xf32>
    %19 = vector.shape_cast %18 : vector<1x32x1xf32> to vector<32x1xf32>
    %20 = vector.broadcast %19 : vector<32x1xf32> to vector<32x256xf32>
    %21 = arith.addf %17, %20 : vector<32x256xf32>
    %cst_16 = arith.constant 0.000000e+00 : f32
    %22 = vector.broadcast %cst_16 : f32 to vector<32x256xf32>
    %23 = arith.maximumf %21, %22 : vector<32x256xf32>
    %24 = arith.truncf %23 : vector<32x256xf32> to vector<32x256xbf16>
    %c0_17 = arith.constant 0 : index
    %c0_18 = arith.constant 0 : index
    %25 = vector.load %arg7[%c0_17, %c0_18] : memref<4x32xbf16, #tpu.memory_space<vmem>>, vector<4x32xbf16>
    %cst_19 = arith.constant dense<0.000000e+00> : vector<4x256xf32>
    %26 = tpu.matmul %25, %24, %cst_19 {dimension_numbers = #tpu.dot_dimension_numbers<[1], [0], [0], [1], [0, 0, 1, 1], [], []>} : vector<4x32xbf16>, vector<32x256xbf16>, vector<4x256xf32> -> vector<4x256xf32>
    %c0_20 = arith.constant 0 : index
    %c0_21 = arith.constant 0 : index
    %27 = vector.load %arg8[%c0_20, %c0_21] : memref<4x1xf32, #tpu.memory_space<vmem>>, vector<4x1xf32>
    %28 = vector.broadcast %27 : vector<4x1xf32> to vector<4x256xf32>
    %29 = arith.addf %26, %28 : vector<4x256xf32>
    %30 = arith.subf %5, %29 : vector<4x256xf32>
    %31 = arith.mulf %30, %30 : vector<4x256xf32>
    %cst_22 = arith.constant dense<0.000000e+00> : vector<256xf32>
    %32 = vector.multi_reduction <add>, %31, %cst_22 [0] : vector<4x256xf32> to vector<256xf32>
    %33 = vector.shape_cast %32 : vector<256xf32> to vector<1x256xf32>
    %c0_23 = arith.constant 0 : index
    %c0_24 = arith.constant 0 : index
    %c0_25 = arith.constant 0 : index
    %34 = vector.load %arg9[%c0_23, %c0_24, %c0_25] : memref<1x1x256xf32, #tpu.memory_space<vmem>>, vector<1x1x256xf32>
    %35 = vector.shape_cast %34 : vector<1x1x256xf32> to vector<1x256xf32>
    %36 = vector.shape_cast %33 : vector<1x256xf32> to vector<1x1x256xf32>
    tpu.vector_store %arg9[%c0_23, %c0_24, %c0_25], %36 {strides = array<i32>} : memref<1x1x256xf32, #tpu.memory_space<vmem>>, vector<1x1x256xf32>,
    return
  }
  func.func @transform_0(%arg0: i32) -> (i32, i32, i32) {
    %c0_i32 = arith.constant 0 : i32
    %c0_i32_0 = arith.constant 0 : i32
    %c0_i32_1 = arith.constant 0 : i32
    return %arg0, %c0_i32, %c0_i32_0 : i32, i32, i32
  }
  func.func @transform_1(%arg0: i32) -> (i32, i32, i32) {
    %c0_i32 = arith.constant 0 : i32
    %c0_i32_0 = arith.constant 0 : i32
    %c0_i32_1 = arith.constant 0 : i32
    return %arg0, %c0_i32, %c0_i32_0 : i32, i32, i32
  }
  func.func @transform_2(%arg0: i32) -> (i32, i32, i32) {
    %c0_i32 = arith.constant 0 : i32
    %c0_i32_0 = arith.constant 0 : i32
    %c0_i32_1 = arith.constant 0 : i32
    return %arg0, %c0_i32, %c0_i32_0 : i32, i32, i32
  }
  func.func @transform_3(%arg0: i32) -> (i32, i32, i32) {
    %c0_i32 = arith.constant 0 : i32
    %c0_i32_0 = arith.constant 0 : i32
    %c0_i32_1 = arith.constant 0 : i32
    return %arg0, %c0_i32, %c0_i32_0 : i32, i32, i32
  }
  func.func @transform_4(%arg0: i32) -> (i32, i32, i32) {
    %c0_i32 = arith.constant 0 : i32
    %c0_i32_0 = arith.constant 0 : i32
    %c0_i32_1 = arith.constant 0 : i32
    return %arg0, %c0_i32, %c0_i32_0 : i32, i32, i32
  }
  func.func @transform_5(%arg0: i32) -> (i32, i32) {
    %c0_i32 = arith.constant 0 : i32
    %c0_i32_0 = arith.constant 0 : i32
    %c0_i32_1 = arith.constant 0 : i32
    return %c0_i32, %c0_i32_0 : i32, i32
  }
  func.func @transform_6(%arg0: i32) -> (i32, i32) {
    %c0_i32 = arith.constant 0 : i32
    %c0_i32_0 = arith.constant 0 : i32
    %c0_i32_1 = arith.constant 0 : i32
    return %c0_i32, %c0_i32_0 : i32, i32
  }
  func.func @transform_7(%arg0: i32) -> (i32, i32) {
    %c0_i32 = arith.constant 0 : i32
    %c0_i32_0 = arith.constant 0 : i32
    %c0_i32_1 = arith.constant 0 : i32
    return %c0_i32, %c0_i32_0 : i32, i32
  }
  func.func @transform_8(%arg0: i32) -> (i32, i32, i32) {
    %c0_i32 = arith.constant 0 : i32
    %c0_i32_0 = arith.constant 0 : i32
    %c0_i32_1 = arith.constant 0 : i32
    return %arg0, %c0_i32, %c0_i32_0 : i32, i32, i32
  }
}

</mosaic_0001>

<bundles_post_ra>
// kernel: tpu_custom_call.1
= control target key start
LH: loop header
LB: loop body
LE: loop exit
PB: predicated region body
PF: predicated region fallthrough
CT: control target
= control target key end

     0   :  { %13 = vsyncpa [#allocation3], 0  ;;  %s1047_s0 = inlined_call_operand.vmem [shape: bf16[2,4,256], index: 0, kind: input, shape index: {}]   ;;  %s1048_s1 = inlined_call_operand.vmem [shape: bf16[2,4,256], index: 1, kind: input, shape index: {}]   ;;  %s1049_s2 = inlined_call_operand.vmem [shape: f32[2,4,1], index: 2, kind: input, shape index: {}]   ;;  %s1050_s3 = inlined_call_operand.vmem [shape: f32[2,4,1], index: 3, kind: input, shape index: {}]   ;;  %s1051_s4 = inlined_call_operand.vmem [shape: f32[2,32,1], index: 4, kind: input, shape index: {}]   ;;  %s1052_s5 = inlined_call_operand.vmem [shape: bf16[32,4], index: 5, kind: input, shape index: {}]   ;;  %s1053_s6 = inlined_call_operand.vmem [shape: bf16[4,32], index: 6, kind: input, shape index: {}]   ;;  %s1054_s7 = inlined_call_operand.vmem [shape: f32[4,1], index: 7, kind: input, shape index: {}]   ;;  %s1055_s8 = inlined_call_operand.hbm [shape: f32[2,1,256], index: 8, kind: output, shape index: {}]  }
   0x1   :  { %15 = vsyncpa [#allocation3 + $0x1], 0  ;;  %s930_s27 = smov 0   ;;  %s932_s28 = smov 0  }
   0x2   :  { %s934_s29 = smov 0   ;;  %s936_s30 = smov 0  }
   0x3 LB: > { %s951_s9 = sadd.s32 4294967295, %s880_s30   ;;  %s747_s10 = sadd.s32 4294967294, %s880_s30   ;;  %s880_s30 = sphi %s936_s30, %s1063_s30   ;;  %s876_s29 = sphi %s934_s29, %s1062_s29   ;;  %s872_s28 = sphi %s932_s28, %s1061_s28   ;;  %s868_s27 = sphi %s930_s27, %s1060_s27  }
   0x4   : > { %s955_s11 = sadd.s32 1, %s880_s30   ;;  %s221_s12 = sadd.s32 1, %s876_s29 }
   0x5   : > { %s218_s13 = ssub.s32 %s880_s30, %s955_s11  ;;  %p231_p0 = scmp.ne.s32.totalorder %s876_s29, %s872_s28 }
   0x6   : > { %p219_p1 = scmp.eq.s32.totalorder %s218_s13, 0  ;;  %p232_p2 = scmp.eq.s32.totalorder %s951_s9, 1 }
   0x7   : > { %p237_p3 = scmp.ne.s32.totalorder %s872_s28, %s868_s27  ;;  %p238_p4 = scmp.eq.s32.totalorder %s747_s10, 1 }
   0x8   : > { %s966_s14 = scalar_select %p219_p1, %s876_s29, %s221_s12  }
   0x9   : > { %p968_p5 = por %p232_p2, %p231_p0  ;;  %p972_p6 = por %p238_p4, %p237_p3 }
   0xa   : > { %1056 = sst [smem:[#allocation5_spill]] %s966_s14  ;;  %p750_p7 = scmp.ge.s32.totalorder %s880_s30, 1 }
   0xb   : > { %p303_p8 = scmp.lt.s32.totalorder %s880_s30, 3 }
   0xd   : > { %p304_p9 = pnand %p750_p7, %p303_p8 }
   0xe   : > { %p355_p10 = scmp.lt.s32.totalorder (!%p304_p9), %s951_s9, 1 }
   0xf   : > { %307 = sbr.rel (%p304_p9) target bundleno = 621 (0x26d), region = 52 }
  0x14   : > { %v882_v0 = vmov 0   ;;  %s356_s17 = scalar_select %p355_p10, %s951_s9, 1  ;;  %v527_v4 = vld [vmem:[%s1054_s7] sm:$0xf]  ;;  %vm454_vm0 = vcmask 1041408   ;;  %vm447_vm1 = vcmask 31744  }
  0x15   : > { %816 = vset.pattern.permute.xlu0 %v882_v0  ;;  %493 = vmatprep.mubr.bf16.mxu0 %v882_v0  ;;  %v818_v25 = vld [vmem:[%s1052_s5] sm:$0xff]   ;;  %v819_v26 = vld [vmem:[%s1052_s5 + $0x8] sm:$0xff]   ;;  %vm533_vm2 = vcmask 261120   ;;  %vm587_vm3 = vcmask 1043456  }
  0x16   : > { %817 = vset.pattern.permute.xlu1 %v882_v0  ;;  %569 = vmatprep.mubr.bf16.mxu1 %v882_v0  ;;  %s771_s18 = sshll.u32 %s356_s17, 2  ;;  %s773_s25 = sshll.u32 %s356_s17, 5  ;;  %v526_v59 = vld [vmem:[%s1053_s6] sm:$0x3] }
  0x17   : > { %s368_s21 = scalar_lea.vmem %s1049_s2, %s771_s18  ;;  %s372_s24 = scalar_lea.vmem %s1050_s3, %s771_s18 }
  0x18   : > { %v383_v1 = vld [vmem:[%s368_s21] sm:$0xf]  ;;  %s377_s12 = scalar_lea.vmem %s1051_s4, %s773_s25  ;;  %s359_s20 = scalar_lea.vmem %s1047_s0, %s771_s18 }
  0x19   : > { %386 = vperm.xlu0 %816, %v383_v1   ;;  %v394_v2 = vld [vmem:[%s372_s24] sm:$0xf]  ;;  %v415_v5 = vld [vmem:[%s377_s12 + $0x10] sm:$0xff]  ;;  %v416_v6 = vld [vmem:[%s377_s12 + $0x18] sm:$0xff]  ;;  %s364_s23 = scalar_lea.vmem %s1048_s1, %s771_s18  ;;  %s774_s17 = sshll.u32 %s951_s9, 5 }
  0x1a   : > { %v413_v3 = vld [vmem:[%s377_s12] sm:$0xff]  ;;  %429 = vperm.xlu1 %817, %v415_v5   ;;  %v414_v7 = vld [vmem:[%s377_s12 + $0x8] sm:$0xff]  ;;  %s352_s12 = sand.u32 1, %s872_s28   ;;  %s884_s24 = smov [#allocation2]  }
  0x1b   : > { %v379_v8 = vld [vmem:[%s359_s20] sm:$0xf]  ;;  %s751_s13 = sshll.u32 %s352_s12, 1  ;;  %s626_s14 = scalar_lea.sflag [#allocation3], %s352_s12 }
  0x1c   : > { %v381_v9 = vld [vmem:[%s364_s23] sm:$0xf]  ;;  %v380_v10 = vunpack.c.l.bf16 %v379_v8  ;;  %s354_s19 = scalar_lea.vmem [#allocation2], %s751_s13  ;;  %s638_s23 = scalar_lea.hbm %s1055_s8, %s774_s17 }
  0x1d   : > { %397 = vperm.xlu0 %816, %v394_v2   ;;  %v998_v11 = vunpack.c.l.bf16 %v381_v9  ;;  %s640_s20 = sshll.u32 %s354_s19, 4  ;;  %s824_s25 = sshll.u32 %s884_s24, 4  ;;  %s641_s20 = int_to_ptr.vmem [resolvable:$true] %s640_s20  ;;  %s825_s25 = int_to_ptr.vmem [resolvable:$false] %s824_s25 }
  0x1e   : > { %434 = vperm.xlu1 %817, %v416_v6   ;;  %v390_v13 = vcombine.high %v380_v10, %v380_v10  ;;  %s820_s18 = scalar_lea.vmem %s641_s20, 32  ;;  %s826_s9 = scalar_lea.vmem %s825_s25, 64 }
  0x1f   : > { %v401_v14 = vcombine.high %v998_v11, %v998_v11  ;;  %p821_p11 = scmp.ne.s32.totalorder %s641_s20, %s820_s18  ;;  %p827_p0 = scmp.lt.s32.totalorder %s641_s20, %s825_s25 }
  0x20   : > { %p828_p1 = scmp.lt.s32.totalorder %s826_s9, %s820_s18 }
  0x21   : > { %419 = vperm.xlu0 %816, %v413_v3   ;;  %p822_p12 = pnand %p821_p11, %p968_p5 }
  0x22   : > { %424 = vperm.xlu1 %817, %v414_v7   ;;  %p829_p2 = por %p828_p1, %p827_p0 }
  0x23   : > { %p823_p13 = pneg %p822_p12 }
  0x25   : > { %530 = vperm.xlu0 %816, %v527_v4   ;;  %p830_p3 = pnand %p829_p2, %p823_p13 }
  0x94   : > { %v387_v12 = vpop.permute.xlu0 %386 }
  0x95   : > { %v392_v16 = vmul.f32 %v387_v12, %v380_v10  ;;  %v393_v17 = vmul.f32 %v390_v13, %v387_v12  ;;  %v430_v27 = vpop.permute.xlu1 %429 }
  0x98   : > { %v398_v15 = vpop.permute.xlu0 %397 }
  0x99   : > { %v403_v18 = vmul.f32 %v398_v15, %v998_v11  ;;  %v404_v19 = vmul.f32 %v401_v14, %v398_v15  ;;  %v435_v31 = vpop.permute.xlu1 %434  ;;  %v883_v15 = vmov 1966171168  }
  0x9b   : > { %v406_v20 = vadd.f32 %v404_v19, %v393_v17  ;;  %v405_v21 = vadd.f32 %v403_v18, %v392_v16  ;;  %v606_v16 = vunpack.c.l.s4 %v883_v15  ;;  %v608_v17 = vlaneseq }
  0x9c   : > { %v420_v40 = vpop.permute.xlu0 %419 }
  0x9d   : > { %v408_v22 = vpack.c.bf16 %v406_v20, %v406_v20  ;;  %v407_v23 = vpack.c.bf16 %v405_v21, %v405_v21  ;;  %v425_v35 = vpop.permute.xlu1 %424  ;;  %v607_v21 = vunpack.c.0.s8 %v606_v16  ;;  %vm622_vm4 = vcmp.lt.s32.totalorder %v608_v17, 256 }
  0x9f   : > { %762 = vmatprep.subr.msk.bf16.mxu0 %vm454_vm0, %v408_v22  ;;  %v456_v24 = vsel %vm454_vm0, %v407_v23, 0  ;;  %v609_v22 = vshrl.u32 %v608_v17, 7 }
  0xa0   : > { %476 = vmatpush1.bf16.msra.mxu0 %v456_v24  ;;  %v531_v61 = vpop.permute.xlu0 %530 }
  0xa3   : > { %763 = vmatmul.mubr.msk.bf16.vlgmr.msra.gmra.mxu0 %vm447_vm1, %v818_v25 }
  0xa4   : > { %503 = vmatprep.mubr.bf16.mxu0 %v882_v0 }
  0xab   : > { %764 = vmatmul.mubr.msk.bf16.gmra.mxu0 %vm447_vm1, %v819_v26  ;;  %v610_v26 = vsub.s32 %v607_v21, %v609_v22 }
 0x163   : > { %v495_v28 = vpop.f32.mrf.mxu0 }
 0x164   : > { %v496_v50 = vadd.f32 %v495_v28, %v420_v40 }
 0x165   : > { %v497_v29 = vpop.f32.mrf.mxu0 }
 0x166   : > { %v498_v43 = vadd.f32 %v497_v29, %v420_v40  ;;  %v514_v57 = vmax.f32 %v496_v50, 0.0 }
 0x167   : > { %v499_v30 = vpop.f32.mrf.mxu0 }
 0x168   : > { %v500_v45 = vadd.f32 %v499_v30, %v425_v35  ;;  %v515_v52 = vmax.f32 %v498_v43, 0.0 }
 0x169   : > { %v501_v32 = vpop.f32.mrf.mxu0 }
 0x16a   : > { %v502_v37 = vadd.f32 %v501_v32, %v425_v35  ;;  %v516_v54 = vmax.f32 %v500_v45, 0.0 }
 0x16b   : > { %v505_v33 = vpop.f32.mrf.mxu0 }
 0x16c   : > { %v506_v41 = vadd.f32 %v505_v33, %v430_v27  ;;  %v517_v47 = vmax.f32 %v502_v37, 0.0  ;;  %v522_v58 = vpack.c.bf16 %v516_v54, %v514_v57 }
 0x16d   : > { %v507_v34 = vpop.f32.mrf.mxu0 }
 0x16e   : > { %v508_v38 = vadd.f32 %v507_v34, %v430_v27  ;;  %v518_v51 = vmax.f32 %v506_v41, 0.0  ;;  %v523_v56 = vpack.c.bf16 %v517_v47, %v515_v52 }
 0x16f   : > { %v509_v36 = vpop.f32.mrf.mxu0 }
 0x170   : > { %v510_v39 = vadd.f32 %v509_v36, %v435_v31  ;;  %v519_v48 = vmax.f32 %v508_v38, 0.0 }
 0x171   : > { %v511_v42 = vpop.f32.mrf.mxu0 }
 0x172   : > { %v512_v44 = vadd.f32 %v511_v42, %v435_v31  ;;  %v520_v46 = vmax.f32 %v510_v39, 0.0 }
 0x174   : > { %v521_v49 = vmax.f32 %v512_v44, 0.0  ;;  %v524_v55 = vpack.c.bf16 %v520_v46, %v518_v51 }
 0x176   : > { %v525_v53 = vpack.c.bf16 %v521_v49, %v519_v48 }
 0x178   : > { %549 = vmatprep.subr.bf16.mxu1 %v525_v53 }
 0x179   : > { %550 = vmatpush1.bf16.msra.mxu1 %v524_v55 }
 0x17a   : > { %551 = vmatprep.subr.bf16.mxu1 %v523_v56 }
 0x17d   : > { %552 = vmatpush1.bf16.msra.mxu1 %v522_v58 }
 0x180   : > { %765 = vmatmul.mubr.msk.bf16.vlgmr.msra.gmra.mxu1 %vm533_vm2, %v526_v59 }
 0x240   : > { %v571_v60 = vpop.f32.mrf.mxu1 }
 0x241   : > { %v572_v63 = vadd.f32 %v571_v60, %v531_v61 }
 0x242   : > { %v573_v62 = vpop.f32.mrf.mxu1 }
 0x243   : > { %v574_v0 = vadd.f32 %v573_v62, %v531_v61 }
 0x244   : > { %v575_v1 = vpop.f32.mrf.mxu1 }
 0x245   : > { %v580_v2 = vcombine.low %v572_v63, %v574_v0 }
 0x246   : > { %v576_v3 = vpop.f32.mrf.mxu1 }
 0x247   : > { %v582_v4 = vsub.f32 %v998_v11, %v580_v2 }
 0x249   : > { %v583_v5 = vmul.f32 %v582_v4, %v582_v4 }
 0x24b   : > { %v585_v6 = vcombine.high %v583_v5, %v583_v5  ;;  %v588_v7 = vsel %vm587_vm3, %v583_v5, 0.0 }
 0x24c   : > { %v589_v8 = vrot.slane %v588_v7, 4 }
 0x24d   : > { %v595_v9 = vsel %vm587_vm3, %v585_v6, 0.0 }
 0x24e   : > { %v590_v10 = vadd.f32 %v589_v8, %v588_v7  ;;  %v596_v12 = vrot.slane %v595_v9, 4 }
 0x250   : > { %v591_v13 = vrot.slane %v590_v10, 2  ;;  %v597_v14 = vadd.f32 %v596_v12, %v595_v9 }
 0x252   : > { %v592_v18 = vadd.f32 %v591_v13, %v590_v10  ;;  %v598_v19 = vrot.slane %v597_v14, 2 }
 0x254   : > { %v593_v20 = vrot.slane %v592_v18, 1  ;;  %v599_v11 = vadd.f32 %v598_v19, %v597_v14 }
 0x256   : > { %v600_v23 = vrot.slane %v599_v11, 1  ;;  %v594_v24 = vadd.f32 %v593_v20, %v592_v18 }
 0x258   : > { %v601_v25 = vadd.f32 %v600_v23, %v599_v11 }
 0x25a   : > { %v604_v27 = vcombine.low %v594_v24, %v601_v25 }
 0x25c   : > { %v611_v28 = vrot.slane %v604_v27, %v610_v26 }
 0x25e   : > { %v618_v29 = vrot.slane %v611_v28, %v610_v26 }
 0x260   : > { %624 = vst.msk [vmem:[%s354_s19] sm:$0x3] %vm622_vm4, %v618_v29 }
 0x261   : > { %833 = shalt.err (!%p830_p3)
}
 0x262   : > { %s834_s26 = scalar_lea.hbm %s638_s23, 32  ;;  %s838_s13 = scalar_lea.hbm %s1055_s8, 64 }
 0x263   : > { %p835_p4 = scmp.ne.s32.totalorder %s638_s23, %s834_s26  ;;  %p839_p9 = scmp.lt.s32.totalorder %s638_s23, %s1055_s8 }
 0x264   : > { %p840_p10 = scmp.lt.s32.totalorder %s838_s13, %s834_s26 }
 0x265   : > { %p836_p7 = pnand %p835_p4, %p968_p5 }
 0x266   : > { %p841_p11 = por %p840_p10, %p839_p9 }
 0x267   : > { %p837_p8 = pneg %p836_p7 }
 0x269   : > { %p842_p12 = pnand %p841_p11, %p837_p8 }
 0x26b   : > { %845 = shalt.err (!%p842_p12)
}
 0x26c   : > { %775 = dma.vmem_to_hbm [thread:$0]  (%p968_p5), %s641_s20, 32, %s638_s23, %s626_s14  }
 0x26d PF: > { %p781_p13 = scmp.ge.s32.totalorder %s880_s30, 2  ;;  %s652_s21 = sand.u32 1, %s868_s27  }
 0x26e   : > { %s653_s22 = scalar_lea.sflag [#allocation3], %s652_s21 }
 0x26f   : > { %p778_p0 = pnand %p781_p13, %p972_p6 }
 0x271   : > { %p779_p1 = pneg %p778_p0 }
 0x273   : > { %863 = dma.done.wait (%p779_p1), %s653_s22, 32  }
 0x274   : > { %865 = vsyncadd (%p779_p1), %s653_s22, 4294967264  ;;  %s1059_s18 = sld [smem:[#allocation5_spill]]  ;;  %p18_p2 = scmp.ge.s32.totalorder %s955_s11, 4  }
 0x275   : > { %s1060_s27 = smov %s872_s28  ;;  %s1061_s28 = smov %s876_s29 }
 0x276   : > { %s1063_s30 = smov %s955_s11  ;;  %20 = sbr.rel (!%p18_p2) target bundleno = 3 (0x3), region = 99 }
 0x27a   : > { %s1062_s29 = smov %s1059_s18 }
 0x27b   :  { %658 = vsyncpa [#allocation3], 1 }
 0x27c   :  { %660 = vsyncpa [#allocation3 + $0x1], 1 }

</bundles_post_ra>
